<compile_context>
chip_gen: v7x
topology: tpu7x:2x2x1
jax: 0.10.0
libtpu: 0.0.40
codegen_flags: <defaults>
</compile_context>

<pallas_src>
from functools import partial

import jax
import jax.numpy as jnp
from jax import lax
from jax.experimental import pallas as pl
from jax.experimental.pallas import tpu as pltpu

# Large finite negative: exp() underflows to exactly 0, no inf-inf NaN risk.
_MASK_VALUE = -1e30


def _kv_proj_kernel(k_ref, v_ref, wk_ref, bk_ref, wv_ref, bv_ref,
                    kp_ref, vp_ref):
    """One grid step = one (batch, kv-tile): fused K and V linear projections.

    k_ref / v_ref: (tk, D)   wk/wv: (D, D) [in, out]   bk/bv: (1, D)
    kp_ref / vp_ref: (tk, D) outputs in the compute dtype.
    """
    kp = jnp.dot(k_ref[...], wk_ref[...], preferred_element_type=jnp.float32)
    kp_ref[...] = (kp + bk_ref[...].astype(jnp.float32)).astype(kp_ref.dtype)
    vp = jnp.dot(v_ref[...], wv_ref[...], preferred_element_type=jnp.float32)
    vp_ref[...] = (vp + bv_ref[...].astype(jnp.float32)).astype(vp_ref.dtype)


def _flash_attn_kernel(q_ref, kp_ref, vp_ref, wq_ref, bq_ref, o_ref,
                       qp_ref, m_ref, l_ref, acc_ref,
                       *, kv_len, block_k, mask_kv):
    """One grid step = one (batch, q-tile, kv-tile).

    q_ref: (tq, D)   kp_ref / vp_ref: (tk, D)   wq: (D, D) [in, out], scale
    folded   bq: (1, D)   o_ref: (tq, D)
    Scratch persists across the kv-tile ("arbitrary") axis: projected Q,
    running max / denominator (f32), and an f32 output accumulator.
    """
    ki = pl.program_id(2)

    @pl.when(ki == 0)
    def _init():
        qp = jnp.dot(q_ref[...], wq_ref[...],
                     preferred_element_type=jnp.float32)
        qp_ref[...] = (qp + bq_ref[...].astype(jnp.float32)).astype(qp_ref.dtype)
        m_ref[...] = jnp.full(m_ref.shape, -jnp.inf, jnp.float32)
        l_ref[...] = jnp.zeros(l_ref.shape, jnp.float32)
        acc_ref[...] = jnp.zeros(acc_ref.shape, jnp.float32)

    # Scores: contract the feature dim of both operands (no kp transpose);
    # bf16 x bf16 -> f32 on the MXU when the compute dtype is bf16.
    s = lax.dot_general(qp_ref[...], kp_ref[...],
                        dimension_numbers=(((1,), (1,)), ((), ())),
                        preferred_element_type=jnp.float32)       # (tq, tk)
    if mask_kv:  # zero softmax weight of padded kv rows (exact)
        col = ki * block_k + lax.broadcasted_iota(jnp.int32, s.shape, 1)
        s = jnp.where(col < kv_len, s, _MASK_VALUE)

    # Online (flash) softmax update, f32 statistics.
    m_prev = m_ref[...]
    m_new = jnp.maximum(m_prev, jnp.max(s, axis=-1, keepdims=True))
    alpha = jnp.exp(m_prev - m_new)
    p = jnp.exp(s - m_new)
    l_ref[...] = alpha * l_ref[...] + jnp.sum(p, axis=-1, keepdims=True)
    acc_ref[...] = alpha * acc_ref[...] + jnp.dot(
        p.astype(vp_ref.dtype), vp_ref[...], preferred_element_type=jnp.float32)
    m_ref[...] = m_new

    @pl.when(ki == pl.num_programs(2) - 1)
    def _finalize():
        # Exact reciprocal on a (tq, 1) tensor -> negligible cost, strict
        # parity with the PyTorch softmax.
        o_ref[...] = (acc_ref[...] *
                      pl.reciprocal(l_ref[...], approx=False)).astype(o_ref.dtype)


def _round_up(x, m):
    return -(-x // m) * m


_VMEM_CAP_BYTES = None


def _vmem_capacity_bytes():
    global _VMEM_CAP_BYTES
    if _VMEM_CAP_BYTES is None:
        try:
            _VMEM_CAP_BYTES = int(pltpu.get_tpu_info().vmem_capacity_bytes)
        except Exception:  # interpret mode / query unavailable
            _VMEM_CAP_BYTES = 64 * 1024 * 1024
    return _VMEM_CAP_BYTES


def _vmem_limit(estimated_bytes):
    # 2x headroom over the static estimate, floor 32 MiB, cap at 3/4 of the
    # chip's physical VMEM (~96 MiB on v5e/v6e, ~48 MiB on v7x).
    cap = (_vmem_capacity_bytes() * 3) // 4
    return int(min(max(2 * int(estimated_bytes), 32 * 1024 * 1024), cap))


def cross_attention(query, key, value, wq, bq, wk, bk, wv, bv, *,
                    block_q=256, block_k=256, compute_dtype=None):
    """Pallas CrossAttention forward.

    query: [B, Sq, D]; key/value: [B, Sk, D]
    wq/wk/wv: [D, D] in PyTorch nn.Linear [out, in] layout; bq/bk/bv: [D]
    compute_dtype: dtype fed to the MXU (defaults to the activation dtype, so
      bf16 activations take the fast bf16 MXU path; accumulation is f32).
    returns: [B, Sq, D] in the query dtype.
    """
    B, Sq, D = query.shape
    _, Sk, _ = key.shape
    out_dtype = query.dtype
    compute_dtype = jnp.dtype(query.dtype if compute_dtype is None
                              else compute_dtype)
    scale = 1.0 / (D ** 0.5)

    # ---- Tile / padding geometry ------------------------------------------
    d_pad = _round_up(D, 128)                 # lane-dense loads and stores
    tq = min(block_q, _round_up(Sq, 8))
    tk = min(block_k, _round_up(Sk, 8))
    sq_pad = _round_up(Sq, tq)
    sk_pad = _round_up(Sk, tk)
    n_q, n_k = sq_pad // tq, sk_pad // tk
    mask_kv = sk_pad != Sk

    # ---- Host-side (cheap XLA) prep: pad, fold scale, transpose to [in,out]
    def _pad_act(x, s_pad):
        ps, pd = s_pad - x.shape[1], d_pad - D
        if ps or pd:
            x = jnp.pad(x, ((0, 0), (0, ps), (0, pd)))
        return x.astype(compute_dtype)

    def _prep_w(w):                           # [out, in] -> [in, out], padded
        wt = w.T
        if d_pad != D:
            wt = jnp.pad(wt, ((0, d_pad - D), (0, d_pad - D)))
        return wt.astype(compute_dtype)

    def _prep_b(b):
        if d_pad != D:
            b = jnp.pad(b, (0, d_pad - D))
        return b.reshape(1, d_pad).astype(compute_dtype)

    q_p = _pad_act(query, sq_pad)
    k_p = _pad_act(key, sk_pad)
    v_p = _pad_act(value, sk_pad)
    wq_t, bq_p = _prep_w(wq * scale), _prep_b(bq * scale)  # scale folded in Q
    wk_t, bk_p = _prep_w(wk), _prep_b(bk)
    wv_t, bv_p = _prep_w(wv), _prep_b(bv)

    csz = compute_dtype.itemsize
    osz = jnp.dtype(out_dtype).itemsize

    def _const_spec():
        # Whole array resident in VMEM: single copy, no per-step DMA, no
        # double-buffering for constant operands.
        return pl.BlockSpec(memory_space=pltpu.MemorySpace.VMEM)

    def _kv_tile_spec():
        return pl.BlockSpec((pl.Squeezed(), tk, d_pad), lambda b, s: (b, s, 0))

    # ---- Kernel 1: fused K / V linear projections ---------------------------
    kv_est = (8 * tk * d_pad * csz                       # k,v in + kp,vp out (x2 buffers)
              + 2 * (d_pad * d_pad + d_pad) * csz        # wk/bk, wv/bv (single copy)
              + 4 * tk * d_pad * 4)                      # f32 intermediates
    kp, vp = pl.pallas_call(
        _kv_proj_kernel,
        out_shape=(jax.ShapeDtypeStruct((B, sk_pad, d_pad), compute_dtype),
                   jax.ShapeDtypeStruct((B, sk_pad, d_pad), compute_dtype)),
        grid_spec=pltpu.PrefetchScalarGridSpec(
            num_scalar_prefetch=0,
            grid=(B, n_k),
            in_specs=[_kv_tile_spec(), _kv_tile_spec(),
                      _const_spec(), _const_spec(),
                      _const_spec(), _const_spec()],
            out_specs=(_kv_tile_spec(), _kv_tile_spec()),
        ),
        compiler_params=pltpu.CompilerParams(
            dimension_semantics=("parallel", "parallel"),
            vmem_limit_bytes=_vmem_limit(kv_est),
        ),
    )(k_p, v_p, wk_t, bk_p, wv_t, bv_p)

    # ---- Kernel 2: Q projection + flash attention over kv tiles -------------
    flash_est = (2 * tq * d_pad * csz                    # q in (double-buffered)
                 + 4 * tk * d_pad * csz                  # kp, vp tiles (double-buffered)
                 + (d_pad * d_pad + d_pad) * csz         # wq / bq (single copy)
                 + 2 * tq * d_pad * osz                  # out (double-buffered)
                 + tq * d_pad * csz                      # projected-Q scratch
                 + tq * d_pad * 4                        # f32 accumulator
                 + 2 * tq * 128 * 4                      # m / l (lane-padded)
                 + 6 * tq * tk * 4)                      # score / p intermediates
    out = pl.pallas_call(
        partial(_flash_attn_kernel, kv_len=Sk, block_k=tk, mask_kv=mask_kv),
        out_shape=jax.ShapeDtypeStruct((B, sq_pad, d_pad), out_dtype),
        grid_spec=pltpu.PrefetchScalarGridSpec(
            num_scalar_prefetch=0,
            grid=(B, n_q, n_k),
            in_specs=[
                pl.BlockSpec((pl.Squeezed(), tq, d_pad),
                             lambda b, qi, ki: (b, qi, 0)),
                pl.BlockSpec((pl.Squeezed(), tk, d_pad),
                             lambda b, qi, ki: (b, ki, 0)),
                pl.BlockSpec((pl.Squeezed(), tk, d_pad),
                             lambda b, qi, ki: (b, ki, 0)),
                _const_spec(), _const_spec(),
            ],
            out_specs=pl.BlockSpec((pl.Squeezed(), tq, d_pad),
                                   lambda b, qi, ki: (b, qi, 0)),
            scratch_shapes=[
                pltpu.VMEM((tq, d_pad), compute_dtype),  # projected Q
                pltpu.VMEM((tq, 1), jnp.float32),        # running max
                pltpu.VMEM((tq, 1), jnp.float32),        # running denominator
                pltpu.VMEM((tq, d_pad), jnp.float32),    # f32 output accumulator
            ],
        ),
        compiler_params=pltpu.CompilerParams(
            dimension_semantics=("parallel", "parallel", "arbitrary"),
            vmem_limit_bytes=_vmem_limit(flash_est),
        ),
    )(q_p, kp, vp, wq_t, bq_p)

    return out[:, :Sq, :D]


def _reference(query, key, value, wq, bq, wk, bk, wv, bv):
    D = query.shape[-1]
    qp = query @ wq.T + bq
    kp = key @ wk.T + bk
    vp = value @ wv.T + bv
    scores = jnp.einsum("bqd,bkd->bqk", qp, kp) / (D ** 0.5)
    attn = jax.nn.softmax(scores, axis=-1)
    return jnp.einsum("bqk,bkd->bqd", attn, vp)


if __name__ == "__main__":
    key0 = jax.random.PRNGKey(0)
    ks = jax.random.split(key0, 9)

    D = 32
    bound = 1.0 / (D ** 0.5)
    wq = jax.random.uniform(ks[3], (D, D), jnp.float32, -bound, bound)
    bq = jax.random.uniform(ks[4], (D,), jnp.float32, -bound, bound)
    wk = jax.random.uniform(ks[5], (D, D), jnp.float32, -bound, bound)
    bk = jax.random.uniform(ks[6], (D,), jnp.float32, -bound, bound)
    wv = jax.random.uniform(ks[7], (D, D), jnp.float32, -bound, bound)
    bv = jax.random.uniform(ks[8], (D,), jnp.float32, -bound, bound)
    params = (wq, bq, wk, bk, wv, bv)

    # Case 1: single q / kv tile, f32 path.
    B, Sq, Sk = 2, 8, 8
    q = jax.random.normal(ks[0], (B, Sq, D), dtype=jnp.float32)
    k = jax.random.normal(ks[1], (B, Sk, D), dtype=jnp.float32)
    v = jax.random.normal(ks[2], (B, Sk, D), dtype=jnp.float32)
    out = jax.block_until_ready(cross_attention(q, k, v, *params))
    ref = _reference(q, k, v, *params)
    assert out.shape == (B, Sq, D)
    assert jnp.allclose(out, ref, atol=2e-3, rtol=2e-3), \
        float(jnp.max(jnp.abs(out - ref)))

    # Case 2: multiple q / kv tiles with ragged (padded + masked) edges.
    B2, Sq2, Sk2 = 2, 40, 24
    q2 = jax.random.normal(ks[0], (B2, Sq2, D), dtype=jnp.float32)
    k2 = jax.random.normal(ks[1], (B2, Sk2, D), dtype=jnp.float32)
    v2 = jax.random.normal(ks[2], (B2, Sk2, D), dtype=jnp.float32)
    out2 = jax.block_until_ready(
        cross_attention(q2, k2, v2, *params, block_q=16, block_k=16))
    ref2 = _reference(q2, k2, v2, *params)
    assert out2.shape == (B2, Sq2, D)
    assert jnp.allclose(out2, ref2, atol=2e-3, rtol=2e-3), \
        float(jnp.max(jnp.abs(out2 - ref2)))

    # Case 3: bf16 activations -> bf16 MXU operands with f32 accumulation.
    qb, kb, vb = (x.astype(jnp.bfloat16) for x in (q2, k2, v2))
    out3 = jax.block_until_ready(
        cross_attention(qb, kb, vb, *params, block_q=16, block_k=16))
    ref3 = _reference(
        qb.astype(jnp.float32), kb.astype(jnp.float32), vb.astype(jnp.float32),
        *(p.astype(jnp.bfloat16).astype(jnp.float32) for p in params))
    assert out3.shape == (B2, Sq2, D)
    assert out3.dtype == jnp.bfloat16
    assert jnp.allclose(out3.astype(jnp.float32), ref3, atol=5e-2, rtol=5e-2), \
        float(jnp.max(jnp.abs(out3.astype(jnp.float32) - ref3)))

    print("KERNEL_OK")
</pallas_src>

<mosaic_0001>
module attributes {stable_mosaic.version = 11 : i64} {
  func.func @_kv_proj_kernel(%arg0: i32, %arg1: i32, %arg2: memref<1x8x128xf32, #tpu.memory_space<vmem>>, %arg3: memref<1x8x128xf32, #tpu.memory_space<vmem>>, %arg4: memref<128x128xf32, #tpu.memory_space<vmem>>, %arg5: memref<1x128xf32, #tpu.memory_space<vmem>>, %arg6: memref<128x128xf32, #tpu.memory_space<vmem>>, %arg7: memref<1x128xf32, #tpu.memory_space<vmem>>, %arg8: memref<1x8x128xf32, #tpu.memory_space<vmem>>, %arg9: memref<1x8x128xf32, #tpu.memory_space<vmem>>) attributes {dimension_semantics = [#tpu.dimension_semantics<parallel>, #tpu.dimension_semantics<parallel>], iteration_bounds = array<i64: 2, 1>, scalar_prefetch = 0 : i64, scratch_operands = 0 : i64, tpu.core_type = #tpu.core_type<tc>, window_params = [{transform_indices = @transform_0, window_bounds = array<i64: 1, 8, 128>}, {transform_indices = @transform_1, window_bounds = array<i64: 1, 8, 128>}, {pipeline_mode = #tpu.pipeline_mode<synchronous>, transform_indices = @transform_2, window_bounds = array<i64: 128, 128>}, {pipeline_mode = #tpu.pipeline_mode<synchronous>, transform_indices = @transform_3, window_bounds = array<i64: 1, 128>}, {pipeline_mode = #tpu.pipeline_mode<synchronous>, transform_indices = @transform_4, window_bounds = array<i64: 128, 128>}, {pipeline_mode = #tpu.pipeline_mode<synchronous>, transform_indices = @transform_5, window_bounds = array<i64: 1, 128>}, {transform_indices = @transform_6, window_bounds = array<i64: 1, 8, 128>}, {transform_indices = @transform_7, window_bounds = array<i64: 1, 8, 128>}]} {
    %c0 = arith.constant 0 : index
    %c0_0 = arith.constant 0 : index
    %c0_1 = arith.constant 0 : index
    %0 = vector.load %arg2[%c0, %c0_0, %c0_1] : memref<1x8x128xf32, #tpu.memory_space<vmem>>, vector<1x8x128xf32>
    %1 = vector.shape_cast %0 : vector<1x8x128xf32> to vector<8x128xf32>
    %c0_2 = arith.constant 0 : index
    %c0_3 = arith.constant 0 : index
    %2 = vector.load %arg4[%c0_2, %c0_3] : memref<128x128xf32, #tpu.memory_space<vmem>>, vector<128x128xf32>
    %cst = arith.constant dense<0.000000e+00> : vector<8x128xf32>
    %3 = tpu.matmul %1, %2, %cst {dimension_numbers = #tpu.dot_dimension_numbers<[1], [0], [0], [1], [0, 0, 1, 1], [], []>} : vector<8x128xf32>, vector<128x128xf32>, vector<8x128xf32> -> vector<8x128xf32>
    %c0_4 = arith.constant 0 : index
    %c0_5 = arith.constant 0 : index
    %4 = vector.load %arg5[%c0_4, %c0_5] : memref<1x128xf32, #tpu.memory_space<vmem>>, vector<1x128xf32>
    %5 = vector.broadcast %4 : vector<1x128xf32> to vector<8x128xf32>
    %6 = arith.addf %3, %5 : vector<8x128xf32>
    %c0_6 = arith.constant 0 : index
    %c0_7 = arith.constant 0 : index
    %c0_8 = arith.constant 0 : index
    %7 = vector.load %arg8[%c0_6, %c0_7, %c0_8] : memref<1x8x128xf32, #tpu.memory_space<vmem>>, vector<1x8x128xf32>
    %8 = vector.shape_cast %7 : vector<1x8x128xf32> to vector<8x128xf32>
    %9 = vector.shape_cast %6 : vector<8x128xf32> to vector<1x8x128xf32>
    tpu.vector_store %arg8[%c0_6, %c0_7, %c0_8], %9 {strides = array<i32>} : memref<1x8x128xf32, #tpu.memory_space<vmem>>, vector<1x8x128xf32>,
    %c0_9 = arith.constant 0 : index
    %c0_10 = arith.constant 0 : index
    %c0_11 = arith.constant 0 : index
    %10 = vector.load %arg3[%c0_9, %c0_10, %c0_11] : memref<1x8x128xf32, #tpu.memory_space<vmem>>, vector<1x8x128xf32>
    %11 = vector.shape_cast %10 : vector<1x8x128xf32> to vector<8x128xf32>
    %c0_12 = arith.constant 0 : index
    %c0_13 = arith.constant 0 : index
    %12 = vector.load %arg6[%c0_12, %c0_13] : memref<128x128xf32, #tpu.memory_space<vmem>>, vector<128x128xf32>
    %cst_14 = arith.constant dense<0.000000e+00> : vector<8x128xf32>
    %13 = tpu.matmul %11, %12, %cst_14 {dimension_numbers = #tpu.dot_dimension_numbers<[1], [0], [0], [1], [0, 0, 1, 1], [], []>} : vector<8x128xf32>, vector<128x128xf32>, vector<8x128xf32> -> vector<8x128xf32>
    %c0_15 = arith.constant 0 : index
    %c0_16 = arith.constant 0 : index
    %14 = vector.load %arg7[%c0_15, %c0_16] : memref<1x128xf32, #tpu.memory_space<vmem>>, vector<1x128xf32>
    %15 = vector.broadcast %14 : vector<1x128xf32> to vector<8x128xf32>
    %16 = arith.addf %13, %15 : vector<8x128xf32>
    %c0_17 = arith.constant 0 : index
    %c0_18 = arith.constant 0 : index
    %c0_19 = arith.constant 0 : index
    %17 = vector.load %arg9[%c0_17, %c0_18, %c0_19] : memref<1x8x128xf32, #tpu.memory_space<vmem>>, vector<1x8x128xf32>
    %18 = vector.shape_cast %17 : vector<1x8x128xf32> to vector<8x128xf32>
    %19 = vector.shape_cast %16 : vector<8x128xf32> to vector<1x8x128xf32>
    tpu.vector_store %arg9[%c0_17, %c0_18, %c0_19], %19 {strides = array<i32>} : memref<1x8x128xf32, #tpu.memory_space<vmem>>, vector<1x8x128xf32>,
    return
  }
  func.func @transform_0(%arg0: i32, %arg1: i32) -> (i32, i32, i32) {
    %c0_i32 = arith.constant 0 : i32
    %c0_i32_0 = arith.constant 0 : i32
    return %arg0, %arg1, %c0_i32 : i32, i32, i32
  }
  func.func @transform_1(%arg0: i32, %arg1: i32) -> (i32, i32, i32) {
    %c0_i32 = arith.constant 0 : i32
    %c0_i32_0 = arith.constant 0 : i32
    return %arg0, %arg1, %c0_i32 : i32, i32, i32
  }
  func.func @transform_2(%arg0: i32, %arg1: i32) -> (i32, i32) {
    %c0_i32 = arith.constant 0 : i32
    %c0_i32_0 = arith.constant 0 : i32
    %c0_i32_1 = arith.constant 0 : i32
    return %c0_i32, %c0_i32_0 : i32, i32
  }
  func.func @transform_3(%arg0: i32, %arg1: i32) -> (i32, i32) {
    %c0_i32 = arith.constant 0 : i32
    %c0_i32_0 = arith.constant 0 : i32
    %c0_i32_1 = arith.constant 0 : i32
    return %c0_i32, %c0_i32_0 : i32, i32
  }
  func.func @transform_4(%arg0: i32, %arg1: i32) -> (i32, i32) {
    %c0_i32 = arith.constant 0 : i32
    %c0_i32_0 = arith.constant 0 : i32
    %c0_i32_1 = arith.constant 0 : i32
    return %c0_i32, %c0_i32_0 : i32, i32
  }
  func.func @transform_5(%arg0: i32, %arg1: i32) -> (i32, i32) {
    %c0_i32 = arith.constant 0 : i32
    %c0_i32_0 = arith.constant 0 : i32
    %c0_i32_1 = arith.constant 0 : i32
    return %c0_i32, %c0_i32_0 : i32, i32
  }
  func.func @transform_6(%arg0: i32, %arg1: i32) -> (i32, i32, i32) {
    %c0_i32 = arith.constant 0 : i32
    %c0_i32_0 = arith.constant 0 : i32
    return %arg0, %arg1, %c0_i32 : i32, i32, i32
  }
  func.func @transform_7(%arg0: i32, %arg1: i32) -> (i32, i32, i32) {
    %c0_i32 = arith.constant 0 : i32
    %c0_i32_0 = arith.constant 0 : i32
    return %arg0, %arg1, %c0_i32 : i32, i32, i32
  }
}

</mosaic_0001>

<bundles_post_ra>
// kernel: tpu_custom_call.1
= control target key start
LH: loop header
LB: loop body
LE: loop exit
PB: predicated region body
PF: predicated region fallthrough
CT: control target
= control target key end

     0   :  { %s1688_s0 = inlined_call_operand.hbm [shape: f32[2,8,128], index: 0, kind: input, shape index: {}]   ;;  %s1689_s1 = inlined_call_operand.hbm [shape: f32[2,8,128], index: 1, kind: input, shape index: {}]   ;;  %s1690_s2 = inlined_call_operand.hbm [shape: f32[128,128], index: 2, kind: input, shape index: {}]   ;;  %s1691_s3 = inlined_call_operand.vmem [shape: f32[1,128], index: 3, kind: input, shape index: {}]   ;;  %s1692_s4 = inlined_call_operand.hbm [shape: f32[128,128], index: 4, kind: input, shape index: {}]   ;;  %s1693_s5 = inlined_call_operand.vmem [shape: f32[1,128], index: 5, kind: input, shape index: {}]   ;;  %s1694_s6 = inlined_call_operand.hbm [shape: f32[2,8,128], index: 6, kind: output, shape index: {0}]   ;;  %s1695_s7 = inlined_call_operand.hbm [shape: f32[2,8,128], index: 7, kind: output, shape index: {1}]  }
   0x1   :  { %1703 = sst [smem:[#allocation23_spill]] %s1690_s2 }
   0x2   :  { %1704 = sst [smem:[#allocation24_spill]] %s1692_s4 }
   0x3   :  { %13 = vsyncpa [#allocation3], 0 }
   0x4   :  { %15 = vsyncpa [#allocation3 + $0x1], 0 }
   0x5   :  { %16 = vsyncpa [#allocation6], 0 }
   0x6   :  { %18 = vsyncpa [#allocation6 + $0x1], 0 }
   0x7   :  { %19 = vsyncpa [#allocation9], 0 }
   0x8   :  { %20 = vsyncpa [#allocation4], 0 }
   0x9   :  { %22 = vsyncpa [#allocation4 + $0x1], 0 }
   0xa   :  { %23 = vsyncpa [#allocation12], 0 }
   0xb   :  { %25 = vsyncpa [#allocation12 + $0x1], 0  ;;  %s1343_s24 = smov 0   ;;  %s1345_s25 = smov 0  }
   0xc   :  { %s1347_s26 = smov 0   ;;  %s1349_s27 = smov 0  }
   0xd   :  { %s1351_s28 = smov 0   ;;  %s1353_s29 = smov 0  }
   0xe LB: > { %1705 = sst [smem:[#allocation19_spill]] %s1286_s28  ;;  %s1374_s30 = sadd.s32 4294967295, %s1290_s29   ;;  %s1290_s29 = sphi %s1353_s29, %s31_s29   ;;  %s1286_s28 = sphi %s1351_s28, %s1730_s28   ;;  %s1282_s27 = sphi %s1349_s27, %s1729_s27   ;;  %s1278_s26 = sphi %s1347_s26, %s1733_s26   ;;  %s1274_s25 = sphi %s1345_s25, %s1732_s25   ;;  %s1270_s24 = sphi %s1343_s24, %s1731_s24  }
   0xf   : > { %s774_s8 = sadd.s32 4294967294, %s1290_s29   ;;  %p65_p0 = scmp.ne.s32.totalorder %s1274_s25, %s1270_s24 }
  0x10   : > { %p1696_p1 = scmp.eq.s32.totalorder %s1374_s30, 0  ;;  %p209_p3 = scmp.eq.s32.totalorder %s774_s8, 1 }
  0x11   : > { %p775_p5 = scmp.ge.s32.totalorder %s1290_s29, 1  ;;  %p244_p7 = scmp.lt.s32.totalorder %s1290_s29, 3 }
  0x12   : > { %p1383_p4 = por %p1696_p1, %p65_p0  ;;  %p1388_p6 = por %p209_p3, %p65_p0 }
  0x13   : > { %p1393_p8 = pnand %p775_p5, %p244_p7  ;;  %s1292_s12 = smov [#allocation7]  }
  0x14   : > { %s1706_s9 = scalar_select %p1383_p4, 1, 0 }
  0x15   : > { %s1707_s10 = scalar_select %p1388_p6, 1, 0 }
  0x16   : > { %s1709_s11 = scalar_select %p1393_p8, 1, 0 }
  0x17   : > { %1708 = sst [smem:[#allocation20_spill]] %s1707_s10  ;;  %s256_s13 = sshll.u32 %s1292_s12, 4  ;;  %s1397_s13 = int_to_ptr.vmem [resolvable:$true] %s256_s13 }
  0x18   : > { %p966_p9 = pneg %p1393_p8  ;;  %s1293_s15 = smov [#allocation8]  }
  0x19   : > { %s272_s16 = sshll.u32 %s1293_s15, 4  ;;  %s1711_s2 = sld [smem:[#allocation23_spill]]  ;;  %s1408_s16 = int_to_ptr.vmem [resolvable:$true] %s272_s16 }
  0x1a   : > { %p1404_p11 = pnand %p966_p9, %p1696_p1 }
  0x1c   : > { %p1050_p13 = pneg %p1404_p11 }
  0x1f   : > { %s1048_s19 = scalar_lea.hbm %s1711_s2, 2048 }
  0x20   : > { %p1049_p12 = scmp.ne.s32.totalorder %s1711_s2, %s1048_s19  ;;  %p1055_p5 = scmp.lt.u32.totalorder %s1048_s19, %s1711_s2 }
  0x22   : > { %p1051_p0 = pnand %p1050_p13, %p1049_p12 }
  0x24   : > { %p1052_p3 = pneg %p1051_p0 }
  0x26   : > { %p1057_p7 = pnand %p1055_p5, %p1052_p3 }
  0x28   : > { %1060 = shalt.err (!%p1057_p7)
}
  0x29   : > { %s1061_s8 = scalar_lea.vmem %s1397_s13, 2048  ;;  %p1069_p2 = scmp.lt.s32.totalorder %s1397_s13, %s1397_s13 }
  0x2a   : > { %p1062_p9 = scmp.ne.s32.totalorder %s1397_s13, %s1061_s8  ;;  %p1070_p12 = scmp.lt.s32.totalorder %s1061_s8, %s1061_s8 }
  0x2c   : > { %p1064_p10 = pnand %p1062_p9, %p1050_p13  ;;  %p1071_p0 = por %p1070_p12, %p1069_p2 }
  0x2e   : > { %p1065_p1 = pneg %p1064_p10 }
  0x30   : > { %p1072_p6 = pnand %p1071_p0, %p1065_p1 }
  0x32   : > { %1075 = shalt.err (!%p1072_p6)
}
  0x33   : > { %s1294_s12 = smov 128   ;;  %s1295_s15 = smov 8  }
  0x34   : > { %969 = dma.hbm_to_vmem [thread:$0]  (!%p1404_p11), %s1711_s2, 2048, %s1397_s13, [#allocation6], %s1294_s12, %s1294_s12, %s1295_s15  }
  0x35   : > { %s1712_s4 = sld [smem:[#allocation24_spill]] }
  0x3b   : > { %s1076_s21 = scalar_lea.hbm %s1712_s4, 2048 }
  0x3c   : > { %p1077_p2 = scmp.ne.s32.totalorder %s1712_s4, %s1076_s21  ;;  %p1083_p10 = scmp.lt.u32.totalorder %s1076_s21, %s1712_s4 }
  0x3e   : > { %p1079_p1 = pnand %p1077_p2, %p1050_p13 }
  0x40   : > { %p1080_p6 = pneg %p1079_p1 }
  0x42   : > { %p1085_p3 = pnand %p1083_p10, %p1080_p6 }
  0x44   : > { %1088 = shalt.err (!%p1085_p3)
}
  0x45   : > { %s1089_s13 = scalar_lea.vmem %s1408_s16, 2048  ;;  %p1097_p12 = scmp.lt.s32.totalorder %s1408_s16, %s1408_s16 }
  0x46   : > { %p1090_p5 = scmp.ne.s32.totalorder %s1408_s16, %s1089_s13  ;;  %p1098_p0 = scmp.lt.s32.totalorder %s1089_s13, %s1089_s13 }
  0x48   : > { %p1092_p7 = pnand %p1090_p5, %p1050_p13  ;;  %p1099_p2 = por %p1098_p0, %p1097_p12 }
  0x4a   : > { %p1093_p9 = pneg %p1092_p7 }
  0x4c   : > { %p1100_p1 = pnand %p1099_p2, %p1093_p9 }
  0x4e   : > { %1103 = shalt.err (!%p1100_p1)
}
  0x4f   : > { %972 = dma.hbm_to_vmem [thread:$0]  (!%p1404_p11), %s1712_s4, 2048, %s1408_s16, [#allocation9], %s1294_s12, %s1294_s12, %s1295_s15  }
  0x50   : > { %s43_s18 = sadd.s32 1, %s1286_s28  ;;  %s52_s19 = sadd.s32 1, %s1278_s26 }
  0x51   : > { %p45_p13 = scmp.ge.s32.totalorder %s43_s18, 2  ;;  %p59_p6 = scmp.ne.s32.totalorder %s1278_s26, %s1274_s25 }
  0x52   : > { %p60_p10 = scmp.eq.s32.totalorder %s1290_s29, 0  ;;  %p989_p3 = scmp.lt.s32.totalorder %s1290_s29, 2 }
  0x53   : > { %s1735_s18 = smov (%p45_p13, %s43_s18), 0  ;;  %p1714_p7 = scmp.eq.s32.totalorder %s1374_s30, 1 }
  0x54   : > { %1713 = sst [smem:[#allocation21_spill]] %s1735_s18  ;;  %p61_p5 = por %p60_p10, %p59_p6 }
  0x55   : > { %p1472_p9 = por %p1714_p7, %p59_p6  ;;  %s47_s20 = ssub.s32 %s1286_s28, %s1735_s18 }
  0x56   : > { %s289_s21 = sand.u32 1, %s1278_s26   ;;  %p50_p12 = scmp.eq.s32.totalorder %s47_s20, 0 }
  0x57   : > { %s1715_s14 = scalar_select %p1472_p9, 1, 0 }
  0x58   : > { %s1479_s16 = sshll.u32 %s289_s21, 3  ;;  %s780_s12 = sshll.u32 %s1286_s28, 7 }
  0x59   : > { %s1483_s15 = scalar_select %p50_p12, %s1278_s26, %s52_s19  }
  0x5a   : > { %s1488_s8 = scalar_lea.hbm %s1688_s0, %s780_s12  ;;  %s293_s13 = scalar_lea.vmem [#allocation2], %s1479_s16 }
  0x5b   : > { %1716 = sst [smem:[#allocation22_spill]] %s1483_s15  ;;  %s301_s10 = sshll.u32 %s293_s13, 4  ;;  %s1497_s10 = int_to_ptr.vmem [resolvable:$true] %s301_s10 }
  0x5c   : > { %p1493_p11 = pnand %p989_p3, %p61_p5  ;;  %s1502_s22 = scalar_lea.hbm %s1689_s1, %s780_s12 }
  0x5d   : > { %s290_s23 = scalar_lea.sflag [#allocation3], %s289_s21  ;;  %s1104_s2 = scalar_lea.hbm %s1488_s8, 128 }
  0x5e   : > { %p1105_p0 = scmp.ne.s32.totalorder %s1488_s8, %s1104_s2  ;;  %p1106_p2 = pneg %p1493_p11 }
  0x5f   : > { %s1109_s18 = scalar_lea.hbm %s1688_s0, 256  ;;  %p1110_p6 = scmp.lt.u32.totalorder %s1488_s8, %s1688_s0 }
  0x60   : > { %p1107_p1 = pnand %p1106_p2, %p1105_p0  ;;  %p1111_p10 = scmp.lt.u32.totalorder %s1109_s18, %s1104_s2 }
  0x61   : > { %p1113_p5 = scmp.lt.u32.totalorder %s1104_s2, %s1488_s8 }
  0x62   : > { %p1108_p13 = pneg %p1107_p1  ;;  %p1112_p3 = por %p1111_p10, %p1110_p6 }
  0x64   : > { %p1114_p7 = por %p1113_p5, %p1112_p3 }
  0x66   : > { %p1115_p12 = pnand %p1114_p7, %p1108_p13 }
  0x68   : > { %1118 = shalt.err (!%p1115_p12)
}
  0x69   : > { %s1119_s21 = scalar_lea.vmem %s1497_s10, 128  ;;  %s1296_s4 = smov [#allocation2]  }
  0x6a   : > { %p1120_p0 = scmp.ne.s32.totalorder %s1497_s10, %s1119_s21  ;;  %s1124_s12 = sshll.u32 %s1296_s4, 4  ;;  %s1125_s12 = int_to_ptr.vmem [resolvable:$false] %s1124_s12 }
  0x6b   : > { %s1126_s28 = scalar_lea.vmem %s1125_s12, 256  ;;  %p1127_p4 = scmp.lt.s32.totalorder %s1497_s10, %s1125_s12 }
  0x6c   : > { %p1122_p1 = pnand %p1120_p0, %p1106_p2  ;;  %p1128_p6 = scmp.lt.s32.totalorder %s1126_s28, %s1119_s21 }
  0x6e   : > { %p1123_p9 = pneg %p1122_p1  ;;  %p1129_p10 = por %p1128_p6, %p1127_p4 }
  0x70   : > { %p1130_p3 = pnand %p1129_p10, %p1123_p9 }
  0x72   : > { %1133 = shalt.err (!%p1130_p3)
}
  0x73   : > { %976 = dma.hbm_to_vmem [thread:$0]  (!%p1493_p11), %s1488_s8, 128, %s1497_s10, %s290_s23  }
  0x74   : > { %s308_s2 = sand.u32 1, %s1290_s29   ;;  %s312_s18 = scalar_lea.vmem [#allocation5], %s1479_s16 }
  0x75   : > { %s320_s15 = sshll.u32 %s312_s18, 4  ;;  %s309_s19 = scalar_lea.sflag [#allocation6], %s308_s2  ;;  %s321_s15 = int_to_ptr.vmem [resolvable:$true] %s320_s15 }
  0x76   : > { %s1134_s20 = scalar_lea.hbm %s1502_s22, 128  ;;  %s1139_s4 = scalar_lea.hbm %s1689_s1, 256 }
  0x77   : > { %p1135_p4 = scmp.ne.s32.totalorder %s1502_s22, %s1134_s20  ;;  %p1140_p5 = scmp.lt.u32.totalorder %s1502_s22, %s1689_s1 }
  0x78   : > { %p1141_p7 = scmp.lt.u32.totalorder %s1139_s4, %s1134_s20  ;;  %p1143_p0 = scmp.lt.u32.totalorder %s1134_s20, %s1502_s22 }
  0x79   : > { %p1137_p9 = pnand %p1135_p4, %p1106_p2 }
  0x7a   : > { %p1142_p12 = por %p1141_p7, %p1140_p5 }
  0x7b   : > { %p1138_p13 = pneg %p1137_p9 }
  0x7c   : > { %p1144_p1 = por %p1143_p0, %p1142_p12 }
  0x7e   : > { %p1145_p6 = pnand %p1144_p1, %p1138_p13 }
  0x80   : > { %1148 = shalt.err (!%p1145_p6)
}
  0x81   : > { %s1149_s16 = scalar_lea.vmem %s321_s15, 128  ;;  %s1297_s8 = smov [#allocation5]  }
  0x82   : > { %p1150_p10 = scmp.ne.s32.totalorder %s321_s15, %s1149_s16  ;;  %s1154_s10 = sshll.u32 %s1297_s8, 4  ;;  %s1155_s10 = int_to_ptr.vmem [resolvable:$false] %s1154_s10 }
  0x83   : > { %s1156_s23 = scalar_lea.vmem %s1155_s10, 256  ;;  %p1157_p9 = scmp.lt.s32.totalorder %s321_s15, %s1155_s10 }
  0x84   : > { %p1152_p3 = pnand %p1150_p10, %p1106_p2  ;;  %p1158_p8 = scmp.lt.s32.totalorder %s1156_s23, %s1149_s16 }
  0x86   : > { %p1153_p4 = pneg %p1152_p3  ;;  %p1159_p5 = por %p1158_p8, %p1157_p9 }
  0x88   : > { %p1160_p7 = pnand %p1159_p5, %p1153_p4 }
  0x8a   : > { %1163 = shalt.err (!%p1160_p7)
}
  0x8b   : > { %979 = dma.hbm_to_vmem [thread:$0]  (!%p1493_p11), %s1502_s22, 128, %s321_s15, %s309_s19  }
  0x8c   : > { %p1718_p13 = scmp.ne.s32.totalorder %s1709_s11, 0 }
  0x8d   : > { %s1553_s2 = sand.u32 (!%p1718_p13), 1, %s1274_s25   ;;  %p1719_p8 = scmp.ne.s32.totalorder (!%p1718_p13), %s1706_s9, 0 }
  0x8e   : > { %329 = sbr.rel (%p1718_p13) target bundleno = 447 (0x1bf), region = 44  ;;  %s1556_s18 = sshll.u32 (!%p1718_p13), %s1553_s2, 3 }
  0x8f   : > { %s332_s20 = scalar_lea.sflag (!%p1718_p13), [#allocation3], %s1553_s2  ;;  %s335_s13 = scalar_lea.vmem (!%p1718_p13), [#allocation2], %s1556_s18 }
  0x95   : > { %1245 = dma.done.wait (%p1719_p8), %s332_s20, 128  }
  0x96   : > { %1247 = vsyncadd (%p1719_p8), %s332_s20, 4294967168  ;;  %s340_s11 = sand.u32 1, %s1374_s30   ;;  %s344_s22 = scalar_lea.vmem [#allocation5], %s1556_s18 }
  0x97   : > { %s341_s17 = scalar_lea.sflag [#allocation6], %s340_s11 }
  0x98   : > { %1249 = dma.done.wait (%p1719_p8), %s341_s17, 128  }
  0x99   : > { %1251 = vsyncadd (%p1719_p8), %s341_s17, 4294967168  ;;  %p1720_p11 = scmp.eq.s32.totalorder %s1374_s30, 0 }
  0x9b   : > { %1253 = dma.done.wait (%p1720_p11), [#allocation6], 2048   ;;  %p1721_p2 = pmov %p1720_p11 }
  0x9d   : > { %1255 = vsyncadd (%p1721_p2), [#allocation6], 4294965248  ;;  %p1722_p12 = pmov %p1721_p2 }
  0x9e   : > { %p1723_p0 = pmov %p1721_p2 }
  0x9f   : > { %1257 = dma.done.wait (%p1722_p12), [#allocation9], 2048  }
  0xa0   : > { %1259 = vsyncadd (%p1723_p0), [#allocation9], 4294965248  ;;  %v1298_v0 = vmov 0.0|0.0   ;;  %vm1299_vm0 = vmmov 0   ;;  %v1300_v1 = vmov 0.0   ;;  %v394_v2 = vld [vmem:[#allocation7] sm:$0xff] }
  0xa1   : > { %902 = vmatprep.subr.bf16.mxu0 %v1298_v0  ;;  %926 = vmatprep.subr.bf16.mxu1 %v1298_v0  ;;  %v395_v3 = vld [vmem:[#allocation7 + $0x8] sm:$0xff]  ;;  %v489_v4 = vld [vmem:[#allocation8] sm:$0xff]  ;;  %v396_v7 = vld [vmem:[#allocation7 + $0x10] sm:$0xff]  ;;  %s794_s30 = sshll.u32 %s1282_s27, 7  ;;  %s385_s19 = scalar_lea.vmem [#allocation10], %s1556_s18 }
  0xa2   : > { %864 = vmatprep.mubr.msk.f32.mxu0 %vm1299_vm0, %v1300_v1  ;;  %899 = vmatprep.mubr.msk.f32.mxu1 %vm1299_vm0, %v1300_v1  ;;  %v903_v5 = vpack.c.bf16 %v395_v3, %v394_v2  ;;  %v490_v6 = vld [vmem:[#allocation8 + $0x8] sm:$0xff]  ;;  %v397_v8 = vld [vmem:[#allocation7 + $0x18] sm:$0xff]  ;;  %v491_v10 = vld [vmem:[#allocation8 + $0x10] sm:$0xff]  ;;  %s603_s21 = sshll.u32 %s385_s19, 4  ;;  %s392_s28 = scalar_lea.vmem [#allocation11], %s1556_s18  ;;  %s1612_s21 = int_to_ptr.vmem [resolvable:$true] %s603_s21 }
  0xa3   : > { %v927_v9 = vpack.c.bf16 %v490_v6, %v489_v4  ;;  %v492_v11 = vld [vmem:[#allocation8 + $0x18] sm:$0xff]  ;;  %v906_v12 = vpack.c.bf16 %v397_v8, %v396_v7  ;;  %v398_v14 = vld [vmem:[#allocation7 + $0x20] sm:$0xff]  ;;  %v399_v15 = vld [vmem:[#allocation7 + $0x28] sm:$0xff]  ;;  %s617_s16 = sshll.u32 %s392_s28, 4  ;;  %s1610_s23 = scalar_lea.hbm %s1694_s6, %s794_s30  ;;  %s1619_s16 = int_to_ptr.vmem [resolvable:$true] %s617_s16 }
  0xa4   : > { %904 = vmatpush3.bf16.msra.mxu0 %v903_v5  ;;  %v930_v13 = vpack.c.bf16 %v492_v11, %v491_v10  ;;  %v493_v16 = vld [vmem:[#allocation8 + $0x20] sm:$0xff]  ;;  %v494_v17 = vld [vmem:[#allocation8 + $0x28] sm:$0xff]  ;;  %v909_v18 = vpack.c.bf16 %v399_v15, %v398_v14  ;;  %v400_v20 = vld [vmem:[#allocation7 + $0x30] sm:$0xff]  ;;  %s1617_s20 = scalar_lea.hbm %s1695_s7, %s794_s30  ;;  %s1164_s11 = scalar_lea.vmem %s1612_s21, 128 }
  0xa5   : > { %928 = vmatpush3.bf16.msra.mxu1 %v927_v9  ;;  %905 = vmatprep.subr.bf16.mxu0 %v1298_v0  ;;  %v933_v19 = vpack.c.bf16 %v494_v17, %v493_v16  ;;  %v401_v21 = vld [vmem:[#allocation7 + $0x38] sm:$0xff]  ;;  %v495_v22 = vld [vmem:[#allocation8 + $0x30] sm:$0xff]  ;;  %v402_v26 = vld [vmem:[#allocation7 + $0x40] sm:$0xff]  ;;  %p1165_p1 = scmp.ne.s32.totalorder %s1612_s21, %s1164_s11  ;;  %p1724_p6 = scmp.ne.s32.totalorder %s1715_s14, 0 }
  0xa6   : > { %929 = vmatprep.subr.bf16.mxu1 %v1298_v0  ;;  %v496_v23 = vld [vmem:[#allocation8 + $0x38] sm:$0xff]  ;;  %v912_v24 = vpack.c.bf16 %v401_v21, %v400_v20  ;;  %v403_v27 = vld [vmem:[#allocation7 + $0x48] sm:$0xff]  ;;  %v497_v28 = vld [vmem:[#allocation8 + $0x40] sm:$0xff]  ;;  %s1301_s17 = smov [#allocation10]  }
  0xa7   : > { %v936_v25 = vpack.c.bf16 %v496_v23, %v495_v22  ;;  %v498_v29 = vld [vmem:[#allocation8 + $0x48] sm:$0xff]  ;;  %v915_v30 = vpack.c.bf16 %v403_v27, %v402_v26  ;;  %v404_v32 = vld [vmem:[#allocation7 + $0x50] sm:$0xff]  ;;  %v405_v33 = vld [vmem:[#allocation7 + $0x58] sm:$0xff]  ;;  %p1166_p10 = pnand %p1165_p1, %p1724_p6 }
  0xa8   : > { %907 = vmatpush3.bf16.msra.mxu0 %v906_v12  ;;  %v939_v31 = vpack.c.bf16 %v498_v29, %v497_v28  ;;  %v499_v34 = vld [vmem:[#allocation8 + $0x50] sm:$0xff]  ;;  %v500_v35 = vld [vmem:[#allocation8 + $0x58] sm:$0xff]  ;;  %v918_v36 = vpack.c.bf16 %v405_v33, %v404_v32  ;;  %v406_v38 = vld [vmem:[#allocation7 + $0x60] sm:$0xff] }
  0xa9   : > { %931 = vmatpush3.bf16.msra.mxu1 %v930_v13  ;;  %908 = vmatprep.subr.bf16.mxu0 %v1298_v0  ;;  %v942_v37 = vpack.c.bf16 %v500_v35, %v499_v34  ;;  %v407_v39 = vld [vmem:[#allocation7 + $0x68] sm:$0xff]  ;;  %v501_v40 = vld [vmem:[#allocation8 + $0x60] sm:$0xff]  ;;  %v408_v44 = vld [vmem:[#allocation7 + $0x70] sm:$0xff]  ;;  %p1167_p3 = pneg %p1166_p10 }
  0xaa   : > { %932 = vmatprep.subr.bf16.mxu1 %v1298_v0  ;;  %v502_v41 = vld [vmem:[#allocation8 + $0x68] sm:$0xff]  ;;  %v921_v42 = vpack.c.bf16 %v407_v39, %v406_v38  ;;  %v409_v45 = vld [vmem:[#allocation7 + $0x78] sm:$0xff]  ;;  %v503_v46 = vld [vmem:[#allocation8 + $0x70] sm:$0xff] }
  0xab   : > { %v945_v43 = vpack.c.bf16 %v502_v41, %v501_v40  ;;  %v504_v47 = vld [vmem:[#allocation8 + $0x78] sm:$0xff]  ;;  %v924_v48 = vpack.c.bf16 %v409_v45, %v408_v44  ;;  %v393_v50 = vld [vmem:[%s335_s13] sm:$0xff]  ;;  %s584_s13 = scalar_lea.sflag [#allocation4], %s1553_s2 }
  0xac   : > { %910 = vmatpush3.bf16.msra.mxu0 %v909_v18  ;;  %v948_v49 = vpack.c.bf16 %v504_v47, %v503_v46  ;;  %v488_v51 = vld [vmem:[%s344_s22] sm:$0xff]  ;;  %v790_v52 = vld [vmem:[%s1691_s3] ss:$0 sm:$0xff]  ;;  %s1168_s22 = sshll.u32 %s1301_s17, 4  ;;  %s1169_s22 = int_to_ptr.vmem [resolvable:$false] %s1168_s22 }
  0xad   : > { %934 = vmatpush3.bf16.msra.mxu1 %v933_v19  ;;  %911 = vmatprep.subr.bf16.mxu0 %v1298_v0  ;;  %v791_v53 = vld [vmem:[%s1693_s5] ss:$0 sm:$0xff]  ;;  %s1170_s9 = scalar_lea.vmem %s1169_s22, 256  ;;  %p1171_p4 = scmp.lt.s32.totalorder %s1612_s21, %s1169_s22 }
  0xae   : > { %935 = vmatprep.subr.bf16.mxu1 %v1298_v0  ;;  %p1172_p9 = scmp.lt.s32.totalorder %s1170_s9, %s1164_s11 }
  0xb0   : > { %913 = vmatpush3.bf16.msra.mxu0 %v912_v24  ;;  %p1173_p5 = por %p1172_p9, %p1171_p4 }
  0xb1   : > { %937 = vmatpush3.bf16.msra.mxu1 %v936_v25  ;;  %914 = vmatprep.subr.bf16.mxu0 %v1298_v0 }
  0xb2   : > { %938 = vmatprep.subr.bf16.mxu1 %v1298_v0  ;;  %p1174_p7 = pnand %p1173_p5, %p1167_p3 }
  0xb4   : > { %916 = vmatpush3.bf16.msra.mxu0 %v915_v30 }
  0xb5   : > { %940 = vmatpush3.bf16.msra.mxu1 %v939_v31  ;;  %917 = vmatprep.subr.bf16.mxu0 %v1298_v0 }
  0xb6   : > { %941 = vmatprep.subr.bf16.mxu1 %v1298_v0 }
  0xb8   : > { %919 = vmatpush3.bf16.msra.mxu0 %v918_v36 }
  0xb9   : > { %943 = vmatpush3.bf16.msra.mxu1 %v942_v37  ;;  %920 = vmatprep.subr.bf16.mxu0 %v1298_v0 }
  0xba   : > { %944 = vmatprep.subr.bf16.mxu1 %v1298_v0 }
  0xbc   : > { %922 = vmatpush3.bf16.msra.mxu0 %v921_v42 }
  0xbd   : > { %946 = vmatpush3.bf16.msra.mxu1 %v945_v43  ;;  %923 = vmatprep.subr.bf16.mxu0 %v1298_v0 }
  0xbe   : > { %947 = vmatprep.subr.bf16.mxu1 %v1298_v0 }
  0xc0   : > { %925 = vmatpush3.bf16.msra.mxu0 %v924_v48 }
  0xc1   : > { %949 = vmatpush3.bf16.msra.mxu1 %v948_v49 }
  0xc3   : > { %865 = vmatmul.mubr.f32.vlgmr.msra.gmra.mrb[0].mxu0 %v393_v50 }
  0xc4   : > { %900 = vmatmul.mubr.f32.vlgmr.msra.gmra.mrb[0].mxu1 %v488_v51 }
 0x196   : > { %v483_v54 = vpop.f32.mrb[0].mxu0 }
 0x197   : > { %v484_v55 = vadd.f32 %v790_v52, %v483_v54  ;;  %v578_v56 = vpop.f32.mrb[0].mxu1  ;;  %v866_v57 = vpop.f32.mrb[1].mxu0 }
 0x198   : > { %v579_v58 = vadd.f32 %v791_v53, %v578_v56  ;;  %v901_v59 = vpop.f32.mrb[1].mxu1 }
 0x199   : > { %487 = vst [vmem:[%s385_s19] sm:$0xff] %v484_v55 }
 0x19a   : > { %582 = vst [vmem:[%s392_s28] sm:$0xff] %v579_v58 }
 0x19b   : > { %1177 = shalt.err (!%p1174_p7)
}
 0x19c   : > { %s1178_s30 = scalar_lea.hbm %s1610_s23, 128  ;;  %s1182_s4 = scalar_lea.hbm %s1694_s6, 256 }
 0x19d   : > { %p1179_p13 = scmp.ne.s32.totalorder %s1610_s23, %s1178_s30  ;;  %p1183_p2 = scmp.lt.u32.totalorder %s1610_s23, %s1694_s6 }
 0x19e   : > { %p1184_p12 = scmp.lt.u32.totalorder %s1182_s4, %s1178_s30  ;;  %p1186_p1 = scmp.lt.u32.totalorder %s1178_s30, %s1610_s23 }
 0x19f   : > { %p1180_p8 = pnand %p1179_p13, %p1724_p6 }
 0x1a0   : > { %p1185_p0 = por %p1184_p12, %p1183_p2 }
 0x1a1   : > { %p1181_p11 = pneg %p1180_p8 }
 0x1a2   : > { %p1187_p10 = por %p1186_p1, %p1185_p0 }
 0x1a4   : > { %p1188_p3 = pnand %p1187_p10, %p1181_p11 }
 0x1a6   : > { %1191 = shalt.err (!%p1188_p3)
}
 0x1a7   : > { %962 = dma.vmem_to_hbm [thread:$0]  (%p1724_p6), %s1612_s21, 128, %s1610_s23, %s584_s13  }
 0x1a8   : > { %s589_s8 = scalar_lea.sflag [#allocation12], %s1553_s2  ;;  %s1192_s10 = scalar_lea.vmem %s1619_s16, 128 }
 0x1a9   : > { %p1193_p4 = scmp.ne.s32.totalorder %s1619_s16, %s1192_s10  ;;  %s1302_s27 = smov [#allocation11]  }
 0x1aa   : > { %s1196_s18 = sshll.u32 %s1302_s27, 4  ;;  %s1197_s18 = int_to_ptr.vmem [resolvable:$false] %s1196_s18 }
 0x1ab   : > { %p1194_p9 = pnand %p1193_p4, %p1724_p6  ;;  %s1198_s11 = scalar_lea.vmem %s1197_s18, 256 }
 0x1ac   : > { %p1199_p7 = scmp.lt.s32.totalorder %s1619_s16, %s1197_s18  ;;  %p1200_p13 = scmp.lt.s32.totalorder %s1198_s11, %s1192_s10 }
 0x1ad   : > { %p1195_p5 = pneg %p1194_p9 }
 0x1ae   : > { %p1201_p8 = por %p1200_p13, %p1199_p7 }
 0x1b0   : > { %p1202_p11 = pnand %p1201_p8, %p1195_p5 }
 0x1b2   : > { %1205 = shalt.err (!%p1202_p11)
}
 0x1b3   : > { %s1206_s2 = scalar_lea.hbm %s1617_s20, 128  ;;  %s1210_s13 = scalar_lea.hbm %s1695_s7, 256 }
 0x1b4   : > { %p1207_p2 = scmp.ne.s32.totalorder %s1617_s20, %s1206_s2  ;;  %p1211_p1 = scmp.lt.u32.totalorder %s1617_s20, %s1695_s7 }
 0x1b5   : > { %p1212_p10 = scmp.lt.u32.totalorder %s1210_s13, %s1206_s2  ;;  %p1214_p4 = scmp.lt.u32.totalorder %s1206_s2, %s1617_s20 }
 0x1b6   : > { %p1208_p12 = pnand %p1207_p2, %p1724_p6 }
 0x1b7   : > { %p1213_p3 = por %p1212_p10, %p1211_p1 }
 0x1b8   : > { %p1209_p0 = pneg %p1208_p12 }
 0x1b9   : > { %p1215_p9 = por %p1214_p4, %p1213_p3 }
 0x1bb   : > { %p1216_p5 = pnand %p1215_p9, %p1209_p0 }
 0x1bd   : > { %1219 = shalt.err (!%p1216_p5)
}
 0x1be   : > { %963 = dma.vmem_to_hbm [thread:$0]  (%p1724_p6), %s1619_s16, 128, %s1617_s20, %s589_s8  }
 0x1bf PF: > { %s1725_s9 = sld [smem:[#allocation20_spill]]  ;;  %s629_s30 = sand.u32 1, %s1270_s24  }
 0x1c0   : > { %p1727_p13 = scmp.ge.s32.totalorder %s1290_s29, 2  ;;  %s630_s15 = scalar_lea.sflag [#allocation4], %s629_s30 }
 0x1c5   : > { %p1726_p7 = scmp.ne.s32.totalorder %s1725_s9, 0 }
 0x1c7   : > { %p981_p8 = pnand %p1727_p13, %p1726_p7 }
 0x1c9   : > { %1261 = dma.done.wait (!%p981_p8), %s630_s15, 128  }
 0x1ca   : > { %1263 = vsyncadd (!%p981_p8), %s630_s15, 4294967168  ;;  %s639_s19 = scalar_lea.sflag [#allocation12], %s629_s30 }
 0x1cb   : > { %1265 = dma.done.wait (!%p981_p8), %s639_s19, 128  }
 0x1cc   : > { %1267 = vsyncadd (!%p981_p8), %s639_s19, 4294967168  ;;  %s31_s29 = sadd.s32 1, %s1290_s29   ;;  %s1728_s14 = sld [smem:[#allocation22_spill]] }
 0x1cd   : > { %p28_p11 = scmp.ge.s32.totalorder %s31_s29, 4   ;;  %s1729_s27 = sld [smem:[#allocation19_spill]] }
 0x1ce   : > { %s1730_s28 = sld [smem:[#allocation21_spill]]  ;;  %s1731_s24 = smov %s1274_s25 }
 0x1cf   : > { %s1732_s25 = smov %s1278_s26  ;;  %30 = sbr.rel (!%p28_p11) target bundleno = 14 (0xe), region = 127 }
 0x1d2   : > { %s1733_s26 = smov %s1728_s14 }
 0x1d6   :  { %644 = vsyncpa [#allocation3], 1 }
 0x1d7   :  { %646 = vsyncpa [#allocation3 + $0x1], 1 }
 0x1d8   :  { %647 = vsyncpa [#allocation6], 1 }
 0x1d9   :  { %649 = vsyncpa [#allocation6 + $0x1], 1 }
 0x1da   :  { %650 = vsyncpa [#allocation9], 1 }
 0x1db   :  { %651 = vsyncpa [#allocation4], 1 }
 0x1dc   :  { %653 = vsyncpa [#allocation4 + $0x1], 1 }
 0x1dd   :  { %654 = vsyncpa [#allocation12], 1 }
 0x1de   :  { %656 = vsyncpa [#allocation12 + $0x1], 1 }

</bundles_post_ra>
